<compile_context>
chip_gen: v5e
topology: v5e:2x2
jax: 0.10.0
libtpu: 0.0.40
codegen_flags: <defaults>
</compile_context>

<pallas_src>
import numpy as np
import jax
import jax.numpy as jnp
from jax import lax
from jax.experimental import pallas as pl
from jax.experimental.pallas import tpu as pltpu


_LANE = 128
_MAX_LANE_WIDTH = 2048
_TILE_BYTES = 4 * 1024 * 1024          # per-buffer tile budget (review: 4 MiB)
_VMEM_LIMIT = 32 * 1024 * 1024         # >= footprint; also covers v5e's 16 MiB default


# -----------------------------------------------------------------------------
# Sinusoid table -- identical construction to PositionalEncoding's buffer.
# -----------------------------------------------------------------------------
def _sinusoid_table(n_position: int, d_hid: int) -> np.ndarray:
    pos = np.arange(n_position, dtype=np.float64)[:, None]            # (P, 1)
    hid = np.arange(d_hid, dtype=np.int64)[None, :]                   # (1, D)
    angle = pos / np.power(10000.0, 2.0 * (hid // 2) / d_hid)         # (P, D)
    table = np.array(angle, dtype=np.float64)
    table[:, 0::2] = np.sin(table[:, 0::2])
    table[:, 1::2] = np.cos(table[:, 1::2])
    return table[None].astype(np.float32)                             # (1, P, D)


# -----------------------------------------------------------------------------
# Kernel: one (1, TR, L) tile of x plus the matching fp32 positional tile.
# The add is done in fp32 (matches the PyTorch fp32 buffer) and cast on store.
# -----------------------------------------------------------------------------
def _add_pos_kernel(x_ref, pos_ref, o_ref):
    o_ref[...] = (x_ref[...].astype(jnp.float32) + pos_ref[...]).astype(o_ref.dtype)


def _round_up(a: int, m: int) -> int:
    return ((a + m - 1) // m) * m


def _largest_lane_divisor(n: int) -> int:
    """Largest multiple of 128 dividing n, capped at _MAX_LANE_WIDTH (0 if none)."""
    if n % _LANE != 0:
        return 0
    best = 0
    k = 1
    while k * _LANE <= min(n, _MAX_LANE_WIDTH):
        if n % (k * _LANE) == 0:
            best = k * _LANE
        k += 1
    return best


def _native_sublane(itemsize: int) -> int:
    return {1: 32, 2: 16, 4: 8}.get(itemsize, 8)


def positional_encoding_forward(x, pos_table,
                                src_positions_x=None,
                                src_positions_y=None,
                                src_positions_page=None):
    """x: (B, S, D). pos_table: (1, n_position, D) fp32 buffer.

    Matches PositionalEncoding.forward: out = x + pos_table[:, :S].
    The src_positions_* arguments are accepted for signature parity with the
    PyTorch module but are unused (exactly as in the reference forward).
    """
    B, S, D = x.shape
    P = pos_table.shape[1]
    assert S <= P, "sequence length exceeds n_position"
    itemsize = jnp.dtype(x.dtype).itemsize
    sublane = _native_sublane(itemsize)

    # Table stays fp32 in HBM; the cast happens inside the kernel (no extra pass).
    pos = pos_table.astype(jnp.float32)
    # TODO(synk): output dtype follows x.dtype; PyTorch would promote bf16 x to fp32.

    lane_pad = 0
    N = S * D
    if D % _LANE == 0:
        # Already lane-dense: keep the natural layout, window the full table.
        L, R = D, S
        x3 = x
        pos3 = pos                              # (1, P, D)
        Rp = P
    else:
        L = _largest_lane_divisor(N)
        if L > 0:
            # Flatten (S, D) -> (R, L): pure elementwise regrouping (row-major),
            # valid for the broadcast add because the table rows are contiguous.
            R = N // L
            x3 = x.reshape(B, R, L)
            pos_flat = pos.reshape(1, P * D)
            if (P * D) % L == 0:
                Rp = (P * D) // L
                pos3 = pos_flat.reshape(1, Rp, L)   # full table, windowed by BlockSpec
            else:
                Rp = R
                pos3 = lax.slice(pos_flat, (0, 0), (1, N)).reshape(1, R, L)
        else:
            # S*D not a multiple of 128: lane-pad D up to 128 so the output stays
            # lane-dense (unmasked vst); output is sliced back below.
            Dp = _round_up(D, _LANE)
            lane_pad = Dp - D
            L, R, Rp = Dp, S, S
            x3 = jnp.pad(x, ((0, 0), (0, 0), (0, lane_pad)))
            pos3 = jnp.pad(lax.slice(pos, (0, 0, 0), (1, S, D)),
                           ((0, 0), (0, 0), (0, lane_pad)))

    # ---- rows-per-tile under the VMEM budget (budget at fp32 width so the fp32
    # pos tile also stays within ~_TILE_BYTES) -----------------------------------
    tr_cap = max(1, _TILE_BYTES // (L * max(itemsize, 4)))
    if R <= tr_cap:
        TR = R
        # v7x megacore: guarantee >= 2 blocks on the leading parallel axis when
        # the rows allow an aligned split.
        if R >= 2 * sublane:
            TR = min(R, _round_up(-(-R // 2), sublane))
    else:
        TR = max(sublane, (tr_cap // sublane) * sublane)
    TR = min(TR, R)

    # pos is fp32: its second-minor block dim must be a multiple of 8 or equal its
    # full row extent; slice the table to R rows if neither holds.
    if TR % 8 != 0 and TR != Rp:
        pos3 = lax.slice(pos3, (0, 0, 0), (1, R, L))
        Rp = R

    grid = (pl.cdiv(R, TR), B)   # row tiles outermost, batch innermost -> the pos
                                 # block index is constant across the inner B steps.

    cost = pl.CostEstimate(
        flops=B * R * L,
        transcendentals=0,
        bytes_accessed=2 * B * R * L * itemsize + R * L * 4,
    )

    out3 = pl.pallas_call(
        _add_pos_kernel,
        out_shape=jax.ShapeDtypeStruct((B, R, L), x.dtype),
        grid=grid,
        in_specs=[
            pl.BlockSpec((1, TR, L), lambda r, b: (b, r, 0)),   # x tile
            pl.BlockSpec((1, TR, L), lambda r, b: (0, r, 0)),   # pos tile (batch-invariant)
        ],
        out_specs=pl.BlockSpec((1, TR, L), lambda r, b: (b, r, 0)),
        compiler_params=pltpu.CompilerParams(
            # Elementwise: both grid axes independent -> megacore sharding on v7x.
            dimension_semantics=("parallel", "parallel"),
            vmem_limit_bytes=_VMEM_LIMIT,
        ),
        cost_estimate=cost,
    )(x3, pos3)

    if lane_pad:
        out3 = lax.slice(out3, (0, 0, 0), (B, R, D))
    return out3.reshape(B, S, D)


if __name__ == "__main__":
    d_hid = 32
    n_position = 200
    B, S = 2, 8

    # Deterministic "parameters" (buffer): sinusoid table built in-script.
    pos_table = jnp.asarray(_sinusoid_table(n_position, d_hid))  # (1, 200, 32)

    key = jax.random.PRNGKey(0)
    kx, kpx, kpy, kpp = jax.random.split(key, 4)
    x = jax.random.normal(kx, (B, S, d_hid), dtype=jnp.float32)
    # Unused positional-index inputs (kept for signature parity with the module).
    src_positions_x = jax.random.randint(kpx, (B, S), 0, n_position)
    src_positions_y = jax.random.randint(kpy, (B, S), 0, n_position)
    src_positions_page = jax.random.randint(kpp, (B, S), 0, n_position)

    out = positional_encoding_forward(x, pos_table, src_positions_x,
                                      src_positions_y, src_positions_page)
    out = jax.block_until_ready(out)

    # Reference check in plain JAX.
    ref = x + pos_table[:, :S]
    assert out.shape == (B, S, d_hid)
    np.testing.assert_allclose(np.asarray(out), np.asarray(ref), rtol=1e-6, atol=1e-6)
    print("KERNEL_OK")
</pallas_src>

<mosaic_0001>
module attributes {stable_mosaic.version = 11 : i64} {
  func.func @_add_pos_kernel(%arg0: i32, %arg1: i32, %arg2: memref<1x1x256xf32, #tpu.memory_space<vmem>>, %arg3: memref<1x1x256xf32, #tpu.memory_space<vmem>>, %arg4: memref<1x1x256xf32, #tpu.memory_space<vmem>>) attributes {dimension_semantics = [#tpu.dimension_semantics<parallel>, #tpu.dimension_semantics<parallel>], iteration_bounds = array<i64: 1, 2>, scalar_prefetch = 0 : i64, scratch_operands = 0 : i64, tpu.core_type = #tpu.core_type<tc>, window_params = [{transform_indices = @transform_0, window_bounds = array<i64: 1, 1, 256>}, {transform_indices = @transform_1, window_bounds = array<i64: 1, 1, 256>}, {transform_indices = @transform_2, window_bounds = array<i64: 1, 1, 256>}]} {
    %c0 = arith.constant 0 : index
    %c0_0 = arith.constant 0 : index
    %c0_1 = arith.constant 0 : index
    %0 = vector.load %arg2[%c0, %c0_0, %c0_1] : memref<1x1x256xf32, #tpu.memory_space<vmem>>, vector<1x1x256xf32>
    %c0_2 = arith.constant 0 : index
    %c0_3 = arith.constant 0 : index
    %c0_4 = arith.constant 0 : index
    %1 = vector.load %arg3[%c0_2, %c0_3, %c0_4] : memref<1x1x256xf32, #tpu.memory_space<vmem>>, vector<1x1x256xf32>
    %2 = arith.addf %0, %1 : vector<1x1x256xf32>
    %c0_5 = arith.constant 0 : index
    %c0_6 = arith.constant 0 : index
    %c0_7 = arith.constant 0 : index
    %3 = vector.load %arg4[%c0_5, %c0_6, %c0_7] : memref<1x1x256xf32, #tpu.memory_space<vmem>>, vector<1x1x256xf32>
    tpu.vector_store %arg4[%c0_5, %c0_6, %c0_7], %2 {strides = array<i32>} : memref<1x1x256xf32, #tpu.memory_space<vmem>>, vector<1x1x256xf32>,
    return
  }
  func.func @transform_0(%arg0: i32, %arg1: i32) -> (i32, i32, i32) {
    %c0_i32 = arith.constant 0 : i32
    %c0_i32_0 = arith.constant 0 : i32
    return %arg1, %arg0, %c0_i32 : i32, i32, i32
  }
  func.func @transform_1(%arg0: i32, %arg1: i32) -> (i32, i32, i32) {
    %c0_i32 = arith.constant 0 : i32
    %c0_i32_0 = arith.constant 0 : i32
    %c0_i32_1 = arith.constant 0 : i32
    return %c0_i32, %arg0, %c0_i32_0 : i32, i32, i32
  }
  func.func @transform_2(%arg0: i32, %arg1: i32) -> (i32, i32, i32) {
    %c0_i32 = arith.constant 0 : i32
    %c0_i32_0 = arith.constant 0 : i32
    return %arg1, %arg0, %c0_i32 : i32, i32, i32
  }
}

</mosaic_0001>

<bundles_post_ra>
// kernel: tpu_custom_call.1
= control target key start
LH: loop header
LB: loop body
LE: loop exit
PB: predicated region body
PF: predicated region fallthrough
CT: control target
= control target key end

     0   :  { %7 = vsyncpa [#allocation3], 0  ;;  %s722_s0 = inlined_call_operand.hbm [shape: f32[2,1,256], index: 0, kind: input, shape index: {}]   ;;  %s723_s1 = inlined_call_operand.hbm [shape: f32[1,1,256], index: 1, kind: input, shape index: {}]   ;;  %s724_s2 = inlined_call_operand.hbm [shape: f32[2,1,256], index: 2, kind: output, shape index: {}]  }
   0x1   :  { %9 = vsyncpa [#allocation3 + $0x1], 0 }
   0x2   :  { %10 = vsyncpa [#allocation6], 0 }
   0x3   :  { %11 = vsyncpa [#allocation4], 0 }
   0x4   :  { %13 = vsyncpa [#allocation4 + $0x1], 0  ;;  %s573_s9 = smov 0   ;;  %s575_s10 = smov 0  }
   0x5   :  { %s577_s11 = smov 0   ;;  %s579_s12 = smov 0  }
   0x6   :  { %s581_s13 = smov 0   ;;  %s583_s14 = smov 0  }
   0x7 LB: > { %s321_s15 = sadd.s32 4294967295, %s555_s14   ;;  %s322_s16 = sadd.s32 4294967294, %s555_s14   ;;  %s555_s14 = sphi %s583_s14, %s19_s14   ;;  %s551_s13 = sphi %s581_s13, %s736_s13   ;;  %s547_s12 = sphi %s579_s12, %s735_s12   ;;  %s543_s11 = sphi %s577_s11, %s734_s11   ;;  %s539_s10 = sphi %s575_s10, %s733_s10   ;;  %s535_s9 = sphi %s573_s9, %s732_s9  }
   0x8   : > { %p53_p0 = scmp.ne.s32.totalorder %s539_s10, %s535_s9  ;;  %p607_p1 = scmp.eq.s32.totalorder %s321_s15, 0 }
   0x9   : > { %p611_p2 = scmp.eq.s32.totalorder %s321_s15, 1  ;;  %p111_p3 = scmp.eq.s32.totalorder %s322_s16, 1 }
   0xa   : > { %p617_p4 = por %p607_p1, %p53_p0  ;;  %p323_p5 = scmp.ge.s32.totalorder %s555_s14, 1 }
   0xb   : > { %p622_p6 = por %p111_p3, %p53_p0  ;;  %p118_p7 = scmp.lt.s32.totalorder %s555_s14, 3 }
   0xc   : > { %s132_s23 = sshll.u32 %s723_s1, 4  ;;  %p325_p9 = scmp.ge.s32.totalorder %s555_s14, 2  ;;  %s133_s23 = int_to_ptr.hbm [resolvable:$true] %s132_s23 }
   0xd   : > { %p630_p8 = pnand %p323_p5, %p118_p7  ;;  %s557_s25 = smov [#allocation5]  }
   0xe   : > { %s134_s26 = sshll.u32 %s557_s25, 4  ;;  %s28_s27 = sadd.s32 1, %s551_s13  ;;  %s135_s26 = int_to_ptr.vmem [resolvable:$true] %s134_s26 }
   0xf   : > { %p344_p10 = pneg %p630_p8  ;;  %p29_p12 = scmp.ge.s32.totalorder %s28_s27, 2 }
  0x10   : > { %s40_s28 = sadd.s32 1, %s543_s11  ;;  %p47_p13 = scmp.ne.s32.totalorder %s543_s11, %s539_s10 }
  0x11   : > { %p345_p11 = pnand %p344_p10, %p607_p1  ;;  %p48_p0 = scmp.eq.s32.totalorder %s555_s14, 0 }
  0x12   : > { %s738_s27 = smov (%p29_p12, %s28_s27), 0  ;;  %p652_p5 = por %p611_p2, %p47_p13 }
  0x13   : > { %347 = dma.hbm_to_vmem [thread:$0]  (!%p345_p11), %s133_s23, 32, %s135_s26, [#allocation6]  }
  0x14   : > { %p646_p3 = por %p48_p0, %p47_p13  ;;  %s35_s3 = ssub.s32 %s551_s13, %s738_s27 }
  0x15   : > { %p357_p7 = scmp.lt.s32.totalorder %s555_s14, 2  ;;  %p38_p10 = scmp.eq.s32.totalorder %s35_s3, 0 }
  0x16   : > { %s145_s4 = sand.u32 1, %s543_s11   ;;  %s327_s7 = sshll.u32 %s551_s13, 1 }
  0x17   : > { %s326_s5 = sshll.u32 %s145_s4, 1  ;;  %s155_s16 = scalar_lea.hbm %s722_s0, %s327_s7 }
  0x18   : > { %s661_s6 = scalar_select %p38_p10, %s543_s11, %s40_s28  }
  0x19   : > { %s149_s21 = scalar_lea.vmem [#allocation2], %s326_s5  ;;  %s157_s18 = sshll.u32 %s155_s16, 4  ;;  %s158_s18 = int_to_ptr.hbm [resolvable:$true] %s157_s18 }
  0x1a   : > { %s159_s22 = sshll.u32 %s149_s21, 4  ;;  %p349_p2 = pnand %p357_p7, %p646_p3  ;;  %s160_s22 = int_to_ptr.vmem [resolvable:$true] %s159_s22 }
  0x1b   : > { %s146_s23 = scalar_lea.sflag [#allocation3], %s145_s4  ;;  %168 = sbr.rel (%p630_p8) target bundleno = 50 (0x32), region = 28 }
  0x1c   : > { %351 = dma.hbm_to_vmem [thread:$0]  (!%p349_p2), %s158_s18, 32, %s160_s22, %s146_s23  }
  0x1d   : > { %s672_s25 = sand.u32 (!%p630_p8), 1, %s539_s10  }
  0x1e   : > { %s329_s26 = sshll.u32 (!%p630_p8), %s672_s25, 1  ;;  %s171_s28 = scalar_lea.sflag (!%p630_p8), [#allocation3], %s672_s25 }
  0x1f   : > { %s174_s3 = scalar_lea.vmem (!%p630_p8), [#allocation2], %s329_s26 }
  0x20   : > { %522 = dma.done.wait (%p617_p4), %s171_s28, 32  }
  0x21   : > { %524 = vsyncadd (%p617_p4), %s171_s28, 4294967264 }
  0x22   : > { %526 = dma.done.wait (%p607_p1), [#allocation6], 32  }
  0x23   : > { %528 = vsyncadd (%p607_p1), [#allocation6], 4294967264  ;;  %s333_s24 = sshll.u32 %s547_s12, 1  ;;  %v204_v0 = vlaneseq  ;;  %s200_s7 = scalar_lea.vmem [#allocation7], %s329_s26  ;;  %v201_v1 = vld [vmem:[%s174_s3] sm:$0x3] }
  0x24   : > { %s222_s5 = scalar_lea.hbm %s724_s2, %s333_s24  ;;  %s224_s8 = sshll.u32 %s200_s7, 4  ;;  %v202_v2 = vld [vmem:[#allocation5] sm:$0x3]  ;;  %s225_s8 = int_to_ptr.vmem [resolvable:$true] %s224_s8 }
  0x25   : > { %s226_s15 = sshll.u32 %s222_s5, 4  ;;  %vm206_vm0 = vcmp.lt.s32.totalorder %v204_v0, 256  ;;  %v203_v3 = vadd.f32 %v202_v2, %v201_v1  ;;  %s210_s17 = scalar_lea.sflag [#allocation4], %s672_s25  ;;  %s227_s15 = int_to_ptr.hbm [resolvable:$true] %s226_s15 }
  0x26   : > { %s483_s19 = sshra.s32 %s227_s15, 4  ;;  %s489_s22 = scalar_lea.hbm %s724_s2, 4  ;;  %s484_s19 = int_to_ptr.hbm [resolvable:$true] %s483_s19 }
  0x27   : > { %208 = vst.msk [vmem:[%s200_s7] sm:$0x3] %vm206_vm0, %v203_v3  ;;  %s485_s12 = scalar_lea.hbm %s484_s19, 2  ;;  %p490_p11 = scmp.lt.s32.totalorder %s484_s19, %s724_s2 }
  0x28   : > { %p486_p1 = scmp.ne.s32.totalorder %s484_s19, %s485_s12  ;;  %p491_p12 = scmp.lt.s32.totalorder %s489_s22, %s485_s12 }
  0x2a   : > { %p487_p4 = pnand %p486_p1, %p652_p5  ;;  %p492_p13 = por %p491_p12, %p490_p11 }
  0x2c   : > { %p488_p8 = pneg %p487_p4 }
  0x2e   : > { %p493_p0 = pnand %p492_p13, %p488_p8 }
  0x30   : > { %496 = shalt.err (!%p493_p0)
}
  0x31   : > { %342 = dma.vmem_to_hbm [thread:$0]  (%p652_p5), %s225_s8, 32, %s227_s15, %s210_s17  }
  0x32 PF: > { %s238_s25 = sand.u32 1, %s535_s9   ;;  %p353_p3 = pnand %p325_p9, %p622_p6 }
  0x33   : > { %s239_s26 = scalar_lea.sflag [#allocation4], %s238_s25 }
  0x34   : > { %p354_p7 = pneg %p353_p3 }
  0x36   : > { %530 = dma.done.wait (%p354_p7), %s239_s26, 32  }
  0x37   : > { %532 = vsyncadd (%p354_p7), %s239_s26, 4294967264  ;;  %s19_s14 = sadd.s32 1, %s555_s14   ;;  %s732_s9 = smov %s539_s10 }
  0x38   : > { %p16_p10 = scmp.ge.s32.totalorder %s19_s14, 4   ;;  %s733_s10 = smov %s543_s11 }
  0x39   : > { %s734_s11 = smov %s661_s6  ;;  %s735_s12 = smov %s551_s13 }
  0x3a   : > { %s736_s13 = smov %s738_s27  ;;  %18 = sbr.rel (!%p16_p10) target bundleno = 7 (0x7), region = 78 }
  0x3f   :  { %245 = vsyncpa [#allocation3], 1 }
  0x40   :  { %247 = vsyncpa [#allocation3 + $0x1], 1 }
  0x41   :  { %248 = vsyncpa [#allocation6], 1 }
  0x42   :  { %249 = vsyncpa [#allocation4], 1 }
  0x43   :  { %251 = vsyncpa [#allocation4 + $0x1], 1 }

</bundles_post_ra>
